<compile_context>
chip_gen: v5e
topology: v5e:2x2
jax: 0.10.0
libtpu: 0.0.40
codegen_flags: <defaults>
</compile_context>

<pallas_src>
import jax
import jax.numpy as jnp
from jax.experimental import pallas as pl
from jax.experimental.pallas import tpu as pltpu

_LANE = 128                   # TPU lane width
_MAX_COLS = 16384             # widest lane-dense slab presented to the kernel
_TILE_BYTE_BUDGET = 2 << 20   # ~2 MiB per block -> <= 8 MiB live (in+out, x2 buffers)


def _copy_kernel(x_ref, o_ref):
    # Straight VMEM copy of the current tile (the reshape itself is free).
    o_ref[...] = x_ref[...]


def _pick_cols(aligned_total):
    """Largest multiple of 128 that divides aligned_total, capped at _MAX_COLS."""
    cap = min(_MAX_COLS, aligned_total)
    cap -= cap % _LANE
    for c in range(cap, 0, -_LANE):
        if aligned_total % c == 0:
            return c
    return _LANE  # unreachable when aligned_total % 128 == 0


def _copy_2d(flat2d):
    """Materialized identity copy of a (rows, cols) slab, cols % 128 == 0."""
    rows, cols = flat2d.shape
    dtype = flat2d.dtype
    itemsize = jnp.dtype(dtype).itemsize

    # dtype-aware sublane packing: 8 rows (f32), 16 (bf16), 32 (int8/fp8).
    sub = max(8, 32 // itemsize)

    # Big tiles from a byte budget, rounded to the native sublane packing.
    budget_rows = _TILE_BYTE_BUDGET // (cols * itemsize)
    budget_rows -= budget_rows % sub
    budget_rows = max(sub, budget_rows)
    tile_r = min(rows, budget_rows)      # either multiple of `sub`, or full rows

    grid = (pl.cdiv(rows, tile_r),)      # BlockSpec masks the tail block

    return pl.pallas_call(
        _copy_kernel,
        out_shape=jax.ShapeDtypeStruct((rows, cols), dtype),
        grid=grid,
        in_specs=[pl.BlockSpec((tile_r, cols), lambda i: (i, 0))],
        out_specs=pl.BlockSpec((tile_r, cols), lambda i: (i, 0)),
        compiler_params=pltpu.CompilerParams(
            dimension_semantics=("parallel",),
        ),
    )(flat2d)


def transform_pallas(x, out_channels):
    """Equivalent of Transform(out_channels).forward(x) in PyTorch."""
    out_channels = tuple(out_channels)
    total = x.size
    trailing = 1
    for d in out_channels:
        trailing *= d
    assert total % trailing == 0, "input size not divisible by prod(out_channels)"
    lead = total // trailing
    out_shape = (lead,) + out_channels

    if total == 0:
        return x.reshape(out_shape)

    flat = x.reshape(total)
    aligned = (total // _LANE) * _LANE

    if aligned == 0:
        # Tiny lane-unaligned input (< 128 elems): single full-extent block.
        out2d = pl.pallas_call(
            _copy_kernel,
            out_shape=jax.ShapeDtypeStruct((1, total), x.dtype),
        )(flat.reshape(1, total))
        return out2d.reshape(out_shape)

    cols = _pick_cols(aligned)
    rows = aligned // cols
    bulk = _copy_2d(flat[:aligned].reshape(rows, cols)).reshape(aligned)

    if aligned == total:
        return bulk.reshape(out_shape)

    # Lane-unaligned tail (< 128 elems): passed through as glue so the main
    # copy keeps wide, unmasked stores.
    tail = flat[aligned:]
    return jnp.concatenate([bulk, tail]).reshape(out_shape)


if __name__ == "__main__":
    key = jax.random.PRNGKey(0)
    # NCHW input, small shapes: batch=2, channels=4, spatial=16x16.
    x = jax.random.normal(key, (2, 4, 16, 16), dtype=jnp.float32)

    # 2*4*16*16 = 2048 elements -> (-1, 16, 32) = (4, 16, 32).
    out_channels = (16, 32)

    y = transform_pallas(x, out_channels)
    y = jax.block_until_ready(y)

    # Reference: plain JAX reshape (same row-major semantics as torch.reshape).
    y_ref = x.reshape((-1,) + out_channels)

    assert y.shape == (4, 16, 32), y.shape
    assert y.dtype == x.dtype
    assert jnp.array_equal(y, y_ref), "mismatch vs reference reshape"

    print("KERNEL_OK")
</pallas_src>

<mosaic_0001>
module attributes {stable_mosaic.version = 11 : i64} {
  func.func @_copy_kernel(%arg0: i32, %arg1: memref<1x2048xf32, #tpu.memory_space<vmem>>, %arg2: memref<1x2048xf32, #tpu.memory_space<vmem>>) attributes {dimension_semantics = [#tpu.dimension_semantics<parallel>], iteration_bounds = array<i64: 1>, scalar_prefetch = 0 : i64, scratch_operands = 0 : i64, tpu.core_type = #tpu.core_type<tc>, window_params = [{transform_indices = @transform_0, window_bounds = array<i64: 1, 2048>}, {transform_indices = @transform_1, window_bounds = array<i64: 1, 2048>}]} {
    %c0 = arith.constant 0 : index
    %c0_0 = arith.constant 0 : index
    %0 = vector.load %arg1[%c0, %c0_0] : memref<1x2048xf32, #tpu.memory_space<vmem>>, vector<1x2048xf32>
    %c0_1 = arith.constant 0 : index
    %c0_2 = arith.constant 0 : index
    %1 = vector.load %arg2[%c0_1, %c0_2] : memref<1x2048xf32, #tpu.memory_space<vmem>>, vector<1x2048xf32>
    tpu.vector_store %arg2[%c0_1, %c0_2], %0 {strides = array<i32>} : memref<1x2048xf32, #tpu.memory_space<vmem>>, vector<1x2048xf32>,
    return
  }
  func.func @transform_0(%arg0: i32) -> (i32, i32) {
    %c0_i32 = arith.constant 0 : i32
    %c0_i32_0 = arith.constant 0 : i32
    return %arg0, %c0_i32 : i32, i32
  }
  func.func @transform_1(%arg0: i32) -> (i32, i32) {
    %c0_i32 = arith.constant 0 : i32
    %c0_i32_0 = arith.constant 0 : i32
    return %arg0, %c0_i32 : i32, i32
  }
}

</mosaic_0001>

<bundles_post_ra>
// kernel: tpu_custom_call.1
= control target key start
LH: loop header
LB: loop body
LE: loop exit
PB: predicated region body
PF: predicated region fallthrough
CT: control target
= control target key end

     0   :  { %6 = vsyncpa [#allocation3], 0  ;;  %s116_s0 = inlined_call_operand.hbm [shape: f32[1,2048], index: 0, kind: input, shape index: {}]   ;;  %s117_s1 = inlined_call_operand.hbm [shape: f32[1,2048], index: 1, kind: output, shape index: {}]  }
   0x1   :  { %7 = vsyncpa [#allocation4], 0  ;;  %s13_s8 = sshll.u32 %s116_s0, 4  ;;  %s98_s9 = smov [#allocation2]   ;;  %s14_s8 = int_to_ptr.hbm [resolvable:$true] %s13_s8 }
   0x2   :  { %s15_s10 = sshll.u32 %s98_s9, 4  ;;  %s16_s10 = int_to_ptr.vmem [resolvable:$true] %s15_s10 }
   0x3   :  { %18 = dma.hbm_to_vmem [thread:$0]  %s14_s8, 256, %s16_s10, [#allocation3]  }
   0x4   :  { %94 = dma.done.wait [#allocation3], 256  }
   0x5   :  { %95 = vsyncadd [#allocation3], 4294967040  ;;  %s99_s11 = smov [#allocation5]   ;;  %s34_s15 = sshll.u32 %s117_s1, 4  ;;  %v23_v0 = vld [vmem:[#allocation2] sm:$0xff]  ;;  %v24_v1 = vld [vmem:[#allocation2 + $0x8] sm:$0xff]  ;;  %s35_s15 = int_to_ptr.hbm [resolvable:$true] %s34_s15 }
   0x6   :  { %s32_s12 = sshll.u32 %s99_s11, 4  ;;  %25 = vst [vmem:[#allocation5] sm:$0xff] %v23_v0  ;;  %s33_s12 = int_to_ptr.vmem [resolvable:$true] %s32_s12 }
   0x7   :  { %26 = vst [vmem:[#allocation5 + $0x8] sm:$0xff] %v24_v1 }
   0x8   :  { %37 = dma.vmem_to_hbm [thread:$0]  %s33_s12, 256, %s35_s15, [#allocation4]  }
   0x9   :  { %96 = dma.done.wait [#allocation4], 256  }
   0xa   :  { %97 = vsyncadd [#allocation4], 4294967040 }
   0xb   :  { %42 = vsyncpa [#allocation3], 1 }
   0xc   :  { %43 = vsyncpa [#allocation4], 1 }

</bundles_post_ra>
